<compile_context>
chip_gen: v6e
topology: v6e:2x2x1
jax: 0.10.0
libtpu: 0.0.40
codegen_flags: <defaults>
</compile_context>

<pallas_src>
import math

import jax
import jax.numpy as jnp
from jax import lax
from jax.experimental import pallas as pl
from jax.experimental.pallas import tpu as pltpu


def _to_rgb_kernel(w_ref, bias_ref, x_ref, o_ref):
    # w_ref    : (1, 3, C)       per-sample modulated 1x1 conv weight (pre-scaled)
    # bias_ref : (3, 1)          ToRGB bias
    # x_ref    : (1, C, TILE_HW) current spatial tile of the feature map
    # o_ref    : (1, 3, TILE_HW)
    out = jnp.dot(w_ref[0], x_ref[0],
                  preferred_element_type=jnp.float32,
                  precision=lax.Precision.HIGHEST)          # (3, TILE_HW), f32 acc
    o_ref[0] = (out + bias_ref[...]).astype(o_ref.dtype)


def _choose_tile_hw(HW, C, itemsize, target_bytes):
    """Largest power-of-two spatial tile that (a) divides HW, (b) is a multiple
    of 128 lanes, and (c) keeps one x block under target_bytes."""
    if HW % 128 != 0:
        # Odd spatial extents: full axis as one block (always a legal block_shape).
        return HW
    max_elems = max(128, (target_bytes // max(1, C * itemsize)) // 128 * 128)
    tile = 128
    while tile * 2 <= max_elems and tile * 2 <= HW and HW % (tile * 2) == 0:
        tile *= 2
    return tile


def to_rgb_forward(x, style, params, *, target_tile_bytes=8 << 20):
    """x: (B, C, H, W) NCHW (f32 or bf16); style: (B, style_dim)."""
    B, C, H, W = x.shape
    style_dim = style.shape[1]
    HW = H * W

    conv_scale = 1.0 / math.sqrt(C * 1 * 1)        # fan_in = C * k^2, k = 1
    mod_scale = 1.0 / math.sqrt(style_dim)         # EqualLinear scale, lr_mul = 1

    # ---- modulation hoisted to the wrapper: tiny O(B*C) work, traced & retrace-safe ----
    s = (style.astype(jnp.float32)
         @ (params["mod_weight"].astype(jnp.float32) * mod_scale).T
         + params["mod_bias"].astype(jnp.float32))                      # (B, C)
    ema = jnp.asarray(params["ema_var"], jnp.float32).reshape(())       # scalar buffer
    wconv = params["conv_weight"].astype(jnp.float32).reshape(3, C)     # (3, C)
    w_eff = (conv_scale * wconv)[None, :, :] * s[:, None, :]            # (B, 3, C)
    w_eff = w_eff / (jnp.sqrt(ema) + 1e-8)
    bias = params["bias"].astype(jnp.float32).reshape(3, 1)

    # ---- small-resolution fallback (4x4 / 8x8 ToRGB layers): kernel overhead dominates ----
    if HW < 128:
        out = jnp.einsum("boc,bcs->bos", w_eff,
                         x.reshape(B, C, HW).astype(jnp.float32),
                         precision=lax.Precision.HIGHEST)
        out = (out + bias[None, :, :]).astype(x.dtype)
        return out.reshape(B, 3, H, W)

    x3 = x.reshape(B, C, HW)
    itemsize = x.dtype.itemsize
    TILE_HW = _choose_tile_hw(HW, C, itemsize, target_tile_bytes)
    n_sp = HW // TILE_HW

    # Exact double-buffered footprint + headroom; keeps us honest on v5e's 16 MiB
    # default scoped VMEM and well under v7x's 64 MiB physical ceiling.
    vmem_needed = 2 * (C + 3) * TILE_HW * itemsize + 2 * (3 * C + 3) * 4
    vmem_limit = int(min(max(vmem_needed + (4 << 20), 24 << 20), 48 << 20))

    cost = pl.CostEstimate(
        flops=2 * B * 3 * C * HW,
        transcendentals=0,
        bytes_accessed=B * (C + 3) * HW * itemsize + B * 3 * C * 4 + 3 * 4,
    )

    out = pl.pallas_call(
        _to_rgb_kernel,
        out_shape=jax.ShapeDtypeStruct((B, 3, HW), x.dtype),
        grid_spec=pltpu.PrefetchScalarGridSpec(
            num_scalar_prefetch=0,
            grid=(B, n_sp),
            in_specs=[
                pl.BlockSpec((1, 3, C), lambda b, t: (b, 0, 0)),       # w_eff
                pl.BlockSpec((3, 1), lambda b, t: (0, 0)),             # bias
                pl.BlockSpec((1, C, TILE_HW), lambda b, t: (b, 0, t)),  # x tile
            ],
            out_specs=pl.BlockSpec((1, 3, TILE_HW), lambda b, t: (b, 0, t)),
        ),
        # No cross-iteration carry -> both axes parallel (v7x dual-TC sharding).
        compiler_params=pltpu.CompilerParams(
            dimension_semantics=("parallel", "parallel"),
            vmem_limit_bytes=vmem_limit),
        cost_estimate=cost,
    )(w_eff, bias, x3)

    return out.reshape(B, 3, H, W)


def to_rgb_reference(x, style, params):
    """Pure-JAX reference mirroring the PyTorch eval-mode forward."""
    B, C, H, W = x.shape
    style_dim = style.shape[1]
    mod_scale = 1.0 / math.sqrt(style_dim)
    s = style @ (params["mod_weight"] * mod_scale).T + params["mod_bias"]    # (B, C)
    conv_scale = 1.0 / math.sqrt(C)
    w = conv_scale * params["conv_weight"].reshape(1, 3, C) * s[:, None, :]  # (B, 3, C)
    w = w / (jnp.sqrt(jnp.asarray(params["ema_var"], jnp.float32)) + 1e-8)
    out = jnp.einsum("boc,bchw->bohw", w, x, precision=lax.Precision.HIGHEST)
    return out + params["bias"].reshape(1, 3, 1, 1)


if __name__ == "__main__":
    B, C, H, W = 2, 8, 16, 16
    style_dim = 32

    key = jax.random.PRNGKey(0)
    k_x, k_style, k_wconv, k_wmod = jax.random.split(key, 4)

    x = jax.random.normal(k_x, (B, C, H, W), dtype=jnp.float32)
    style = jax.random.normal(k_style, (B, style_dim), dtype=jnp.float32)

    # Parameter shapes match the module's __init__.
    params = {
        "conv_weight": jax.random.normal(k_wconv, (1, 3, C, 1, 1), dtype=jnp.float32),
        "mod_weight": jax.random.normal(k_wmod, (C, style_dim), dtype=jnp.float32),
        "mod_bias": jnp.ones((C,), dtype=jnp.float32),   # EqualLinear bias_init=1
        "bias": jnp.zeros((3,), dtype=jnp.float32),      # ToRGB bias
        "ema_var": jnp.float32(1.0),                     # registered buffer
    }
    # TODO(synk): training-mode EMA buffer update (ema_var.mul_/add_) is a stateful
    # side effect with no clean functional equivalent here; eval-mode path implemented.

    out = to_rgb_forward(x, style, params)
    out = jax.block_until_ready(out)

    ref = to_rgb_reference(x, style, params)
    assert out.shape == (B, 3, H, W)
    assert jnp.allclose(out, ref, atol=1e-4, rtol=1e-4), "mismatch vs reference"

    print("KERNEL_OK")
</pallas_src>

<mosaic_0001>
module attributes {stable_mosaic.version = 11 : i64} {
  func.func @_to_rgb_kernel(%arg0: i32, %arg1: i32, %arg2: memref<1x3x8xf32, #tpu.memory_space<vmem>>, %arg3: memref<3x1xf32, #tpu.memory_space<vmem>>, %arg4: memref<1x8x256xf32, #tpu.memory_space<vmem>>, %arg5: memref<1x3x256xf32, #tpu.memory_space<vmem>>) attributes {dimension_semantics = [#tpu.dimension_semantics<parallel>, #tpu.dimension_semantics<parallel>], iteration_bounds = array<i64: 2, 1>, scalar_prefetch = 0 : i64, scratch_operands = 0 : i64, tpu.core_type = #tpu.core_type<tc>, window_params = [{transform_indices = @transform_0, window_bounds = array<i64: 1, 3, 8>}, {pipeline_mode = #tpu.pipeline_mode<synchronous>, transform_indices = @transform_1, window_bounds = array<i64: 3, 1>}, {transform_indices = @transform_2, window_bounds = array<i64: 1, 8, 256>}, {transform_indices = @transform_3, window_bounds = array<i64: 1, 3, 256>}]} {
    %c0 = arith.constant 0 : index
    %c0_0 = arith.constant 0 : index
    %c0_1 = arith.constant 0 : index
    %0 = vector.load %arg2[%c0, %c0_0, %c0_1] : memref<1x3x8xf32, #tpu.memory_space<vmem>>, vector<1x3x8xf32>
    %1 = vector.shape_cast %0 : vector<1x3x8xf32> to vector<3x8xf32>
    %c0_2 = arith.constant 0 : index
    %c0_3 = arith.constant 0 : index
    %c0_4 = arith.constant 0 : index
    %2 = vector.load %arg4[%c0_2, %c0_3, %c0_4] : memref<1x8x256xf32, #tpu.memory_space<vmem>>, vector<1x8x256xf32>
    %3 = vector.shape_cast %2 : vector<1x8x256xf32> to vector<8x256xf32>
    %cst = arith.constant dense<0.000000e+00> : vector<3x256xf32>
    %4 = tpu.matmul %1, %3, %cst {dimension_numbers = #tpu.dot_dimension_numbers<[1], [0], [0], [1], [0, 0, 1, 1], [], []>, precision = #tpu.contract_precision<fp32>} : vector<3x8xf32>, vector<8x256xf32>, vector<3x256xf32> -> vector<3x256xf32>
    %c0_5 = arith.constant 0 : index
    %c0_6 = arith.constant 0 : index
    %5 = vector.load %arg3[%c0_5, %c0_6] : memref<3x1xf32, #tpu.memory_space<vmem>>, vector<3x1xf32>
    %6 = vector.broadcast %5 : vector<3x1xf32> to vector<3x256xf32>
    %7 = arith.addf %4, %6 : vector<3x256xf32>
    %c0_7 = arith.constant 0 : index
    %c0_8 = arith.constant 0 : index
    %c0_9 = arith.constant 0 : index
    %8 = vector.load %arg5[%c0_7, %c0_8, %c0_9] : memref<1x3x256xf32, #tpu.memory_space<vmem>>, vector<1x3x256xf32>
    %9 = vector.shape_cast %8 : vector<1x3x256xf32> to vector<3x256xf32>
    %10 = vector.shape_cast %7 : vector<3x256xf32> to vector<1x3x256xf32>
    tpu.vector_store %arg5[%c0_7, %c0_8, %c0_9], %10 {strides = array<i32>} : memref<1x3x256xf32, #tpu.memory_space<vmem>>, vector<1x3x256xf32>,
    return
  }
  func.func @transform_0(%arg0: i32, %arg1: i32) -> (i32, i32, i32) {
    %c0_i32 = arith.constant 0 : i32
    %c0_i32_0 = arith.constant 0 : i32
    %c0_i32_1 = arith.constant 0 : i32
    return %arg0, %c0_i32, %c0_i32_0 : i32, i32, i32
  }
  func.func @transform_1(%arg0: i32, %arg1: i32) -> (i32, i32) {
    %c0_i32 = arith.constant 0 : i32
    %c0_i32_0 = arith.constant 0 : i32
    %c0_i32_1 = arith.constant 0 : i32
    return %c0_i32, %c0_i32_0 : i32, i32
  }
  func.func @transform_2(%arg0: i32, %arg1: i32) -> (i32, i32, i32) {
    %c0_i32 = arith.constant 0 : i32
    %c0_i32_0 = arith.constant 0 : i32
    return %arg0, %c0_i32, %arg1 : i32, i32, i32
  }
  func.func @transform_3(%arg0: i32, %arg1: i32) -> (i32, i32, i32) {
    %c0_i32 = arith.constant 0 : i32
    %c0_i32_0 = arith.constant 0 : i32
    return %arg0, %c0_i32, %arg1 : i32, i32, i32
  }
}

</mosaic_0001>

<bundles_post_ra>
// kernel: tpu_custom_call.1
= control target key start
LH: loop header
LB: loop body
LE: loop exit
PB: predicated region body
PF: predicated region fallthrough
CT: control target
= control target key end

     0   :  { %8 = vsyncpa [#allocation3], 0  ;;  %s1111_s0 = inlined_call_operand.vmem [shape: f32[2,3,8], index: 0, kind: input, shape index: {}]   ;;  %s1112_s1 = inlined_call_operand.vmem [shape: f32[3,1], index: 1, kind: input, shape index: {}]   ;;  %s1113_s2 = inlined_call_operand.hbm [shape: f32[2,8,256], index: 2, kind: input, shape index: {}]   ;;  %s1114_s3 = inlined_call_operand.vmem [shape: f32[2,3,256], index: 3, kind: output, shape index: {}]  }
   0x1   :  { %10 = vsyncpa [#allocation3 + $0x1], 0  ;;  %s1001_s12 = smov 0   ;;  %s1003_s13 = smov 0  }
   0x2   :  { %s1005_s14 = smov 0   ;;  %s1007_s15 = smov 0  }
   0x3   :  { %s1009_s16 = smov 0   ;;  %s1011_s17 = smov 0  }
   0x4 LB: > { %s824_s18 = sadd.s32 4294967295, %s976_s17   ;;  %s28_s19 = sadd.s32 1, %s972_s16  ;;  %s976_s17 = sphi %s1011_s17, %s16_s17   ;;  %s972_s16 = sphi %s1009_s16, %s1122_s16   ;;  %s968_s15 = sphi %s1007_s15, %s1121_s15   ;;  %s964_s14 = sphi %s1005_s14, %s1120_s14   ;;  %s960_s13 = sphi %s1003_s13, %s1119_s13   ;;  %s956_s12 = sphi %s1001_s12, %s1118_s12  }
   0x5   : > { %p30_p0 = scmp.ge.s32.totalorder %s28_s19, 2  ;;  %s84_s20 = sadd.s32 1, %s964_s14 }
   0x6   : > { %p91_p1 = scmp.ne.s32.totalorder %s964_s14, %s960_s13  ;;  %p92_p2 = scmp.eq.s32.totalorder %s976_s17, 0 }
   0x7   : > { %s1124_s19 = smov (%p30_p0, %s28_s19), 0  ;;  %p97_p4 = scmp.ne.s32.totalorder %s960_s13, %s956_s12 }
   0x8   : > { %p1037_p3 = por %p92_p2, %p91_p1  ;;  %s79_s22 = ssub.s32 %s972_s16, %s1124_s19 }
   0x9   : > { %p98_p5 = scmp.eq.s32.totalorder %s824_s18, 0  ;;  %p82_p6 = scmp.eq.s32.totalorder %s79_s22, 0 }
   0xa   : > { %p846_p8 = scmp.lt.s32.totalorder %s976_s17, 2  ;;  %s159_s25 = sand.u32 1, %s964_s14  }
   0xb   : > { %p1044_p7 = por %p98_p5, %p97_p4  ;;  %s838_s26 = sshll.u32 %s972_s16, 8 }
   0xc   : > { %s1050_s24 = scalar_select %p82_p6, %s964_s14, %s84_s20  }
   0xd   : > { %s828_s27 = sshll.u32 %s159_s25, 4  ;;  %s171_s30 = scalar_lea.hbm %s1113_s2, %s838_s26 }
   0xe   : > { %s163_s4 = scalar_lea.vmem [#allocation2], %s828_s27  ;;  %p1059_p9 = pnand %p846_p8, %p1037_p3 }
   0xf   : > { %s173_s5 = sshll.u32 %s163_s4, 4  ;;  %p831_p10 = scmp.ge.s32.totalorder %s976_s17, 1  ;;  %s174_s5 = int_to_ptr.vmem [resolvable:$true] %s173_s5 }
  0x10   : > { %p178_p11 = scmp.lt.s32.totalorder %s976_s17, 3  ;;  %s160_s7 = scalar_lea.sflag [#allocation3], %s159_s25 }
  0x11   : > { %p900_p12 = pneg %p1059_p9  ;;  %s911_s8 = scalar_lea.vmem %s174_s5, 256 }
  0x12   : > { %p912_p13 = scmp.ne.s32.totalorder %s174_s5, %s911_s8  ;;  %s978_s9 = smov [#allocation2]  }
  0x13   : > { %s916_s10 = sshll.u32 %s978_s9, 4  ;;  %s917_s10 = int_to_ptr.vmem [resolvable:$false] %s916_s10 }
  0x14   : > { %p914_p0 = pnand %p912_p13, %p900_p12  ;;  %s918_s11 = scalar_lea.vmem %s917_s10, 512 }
  0x15   : > { %p919_p2 = scmp.lt.s32.totalorder %s174_s5, %s917_s10  ;;  %p920_p3 = scmp.lt.s32.totalorder %s918_s11, %s911_s8 }
  0x16   : > { %p915_p1 = pneg %p914_p0 }
  0x17   : > { %p921_p4 = por %p920_p3, %p919_p2 }
  0x19   : > { %p922_p5 = pnand %p921_p4, %p915_p1 }
  0x1b   : > { %925 = shalt.err (!%p922_p5)
}
  0x1c   : > { %845 = dma.hbm_to_vmem [thread:$0]  (!%p1059_p9), %s171_s30, 256, %s174_s5, %s160_s7  }
  0x1d   : > { %p179_p6 = pnand %p831_p10, %p178_p11 }
  0x1e   : > { %s184_s12 = sand.u32 (!%p179_p6), 1, %s960_s13  }
  0x1f   : > { %182 = sbr.rel (%p179_p6) target bundleno = 264 (0x108), region = 32  ;;  %s832_s18 = sshll.u32 (!%p179_p6), %s184_s12, 4 }
  0x20   : > { %s185_s20 = scalar_lea.sflag (!%p179_p6), [#allocation3], %s184_s12  ;;  %s188_s21 = scalar_lea.vmem (!%p179_p6), [#allocation2], %s832_s18 }
  0x24   : > { %951 = dma.done.wait (%p1044_p7), %s185_s20, 256  }
  0x25   : > { %953 = vsyncadd (%p1044_p7), %s185_s20, 4294967040  ;;  %p219_p8 = scmp.lt.s32.totalorder %s968_s15, 1  ;;  %v979_v0 = vmov 0.0   ;;  %v980_v1 = vmov 0   ;;  %vm243_vm0 = vcmask 64512   ;;  %v236_v2 = vld [vmem:[%s188_s21 + $0x8] sm:$0xff] }
  0x26   : > { %313 = vmatprep.mubr.f32.mxu0 %v979_v0  ;;  %399 = vmatprep.mubr.f32.mxu1 %v979_v0  ;;  %v235_v3 = vld [vmem:[%s188_s21] sm:$0xff]  ;;  %v277_v5 = vand.u32 4294901760, %v236_v2 }
  0x27   : > { %s1126_s15 = smov (!%p219_p8, %s968_s15), 1  ;;  %897 = vset.pattern.permute.xlu0 %v980_v1  ;;  %v279_v6 = vand.u32 4294901760, %v235_v3  ;;  %v237_v8 = vld [vmem:[%s1112_s1] sm:$0x7] }
  0x28   : > { %s833_s22 = sshll.u32 %s1126_s15, 2  ;;  %240 = vperm.xlu0 %897, %v237_v8   ;;  %278 = vmatprep.subr.mxu0 %v277_v5  ;;  %v356_v10 = vsub.f32 %v236_v2, %v277_v5  ;;  %s839_s29 = sshll.u32 %s1126_s15, 3 }
  0x29   : > { %s222_s27 = scalar_lea.vmem %s1111_s0, %s833_s22  ;;  %v362_v11 = vsub.f32 %v235_v3, %v279_v6  ;;  %280 = vmatpush1.msra.mxu0 %v279_v6  ;;  %s232_s5 = scalar_lea.vmem %s1114_s3, %s839_s29 }
  0x2a   : > { %v234_v4 = vld [vmem:[%s222_s27] sm:$0x7]  ;;  %v357_v13 = vand.u32 4294901760, %v356_v10  ;;  %439 = vmatprep.subr.mxu0 %v356_v10 }
  0x2b   : > { %v245_v7 = vsel %vm243_vm0, %v234_v4, 0  ;;  %v363_v14 = vand.u32 4294901760, %v362_v11 }
  0x2c   : > { %v314_v9 = vand.u32 4294901760, %v245_v7  ;;  %v358_v16 = vsub.f32 %v356_v10, %v357_v13 }
  0x2d   : > { %v364_v17 = vsub.f32 %v362_v11, %v363_v14 }
  0x2e   : > { %v315_v12 = vsub.f32 %v245_v7, %v314_v9  ;;  %v359_v19 = vand.u32 4294901760, %v358_v16 }
  0x2f   : > { %v365_v20 = vand.u32 4294901760, %v364_v17 }
  0x30   : > { %v316_v15 = vand.u32 4294901760, %v315_v12  ;;  %360 = vmatprep.subr.mxu1 %v359_v19 }
  0x31   : > { %366 = vmatpush1.msra.mxu1 %v365_v20 }
  0x32   : > { %v317_v18 = vsub.f32 %v315_v12, %v316_v15  ;;  %401 = vmatmul.mubr.f32.vlgmr.msra.gmra.mxu1 %v314_v9  ;;  %515 = vmatprep.subr.mxu1 %v277_v5 }
  0x33   : > { %517 = vmatpush1.msra.mxu1 %v279_v6  ;;  %550 = vmatprep.mubr.f32.mxu1 %v979_v0 }
  0x34   : > { %v318_v21 = vand.u32 4294901760, %v317_v18  ;;  %669 = vmatprep.subr.mxu1 %v277_v5 }
  0x36   : > { %319 = vmatmul.mubr.f32.vlgmr.msra.gmra.mxu0 %v318_v21  ;;  %554 = vmatmul.mubr.f32.vlgmr.msra.gmra.mxu1 %v316_v15 }
  0x37   : > { %442 = vmatpush1.msra.mxu0 %v362_v11  ;;  %475 = vmatprep.mubr.f32.mxu0 %v979_v0 }
  0x38   : > { %593 = vmatprep.subr.mxu0 %v357_v13  ;;  %671 = vmatpush1.msra.mxu1 %v279_v6 }
  0x39   : > { %704 = vmatprep.mubr.f32.mxu1 %v979_v0 }
  0x3a   : > { %478 = vmatmul.mubr.f32.vlgmr.msra.gmra.mxu0 %v315_v12  ;;  %706 = vmatmul.mubr.f32.vlgmr.msra.gmra.mxu1 %v314_v9 }
  0x3b   : > { %597 = vmatpush1.msra.mxu0 %v363_v14  ;;  %630 = vmatprep.mubr.f32.mxu0 %v979_v0 }
  0x3e   : > { %632 = vmatmul.mubr.f32.vlgmr.msra.gmra.mxu0 %v314_v9 }
  0xa3   : > { %v241_v22 = vpop.permute.xlu0 %240 }
  0xf2   : > { %v402_v25 = vpop.f32.mrf.mxu1 }
  0xf4   : > { %v404_v29 = vpop.f32.mrf.mxu1 }
  0xf6   : > { %v320_v23 = vpop.f32.mrf.mxu0  ;;  %v555_v33 = vpop.f32.mrf.mxu1 }
  0xf7   : > { %v321_v24 = vadd.f32 %v320_v23, %v241_v22 }
  0xf8   : > { %v322_v26 = vpop.f32.mrf.mxu0  ;;  %v557_v37 = vpop.f32.mrf.mxu1 }
  0xf9   : > { %v403_v27 = vadd.f32 %v402_v25, %v321_v24  ;;  %v323_v28 = vadd.f32 %v322_v26, %v241_v22 }
  0xfa   : > { %v479_v30 = vpop.f32.mrf.mxu0  ;;  %v707_v41 = vpop.f32.mrf.mxu1 }
  0xfb   : > { %v405_v31 = vadd.f32 %v404_v29, %v323_v28  ;;  %v480_v32 = vadd.f32 %v479_v30, %v403_v27 }
  0xfc   : > { %v481_v34 = vpop.f32.mrf.mxu0  ;;  %v709_v44 = vpop.f32.mrf.mxu1 }
  0xfd   : > { %v556_v35 = vadd.f32 %v555_v33, %v480_v32  ;;  %v482_v36 = vadd.f32 %v481_v34, %v405_v31 }
  0xfe   : > { %v633_v38 = vpop.f32.mrf.mxu0 }
  0xff   : > { %v558_v39 = vadd.f32 %v557_v37, %v482_v36  ;;  %v634_v40 = vadd.f32 %v633_v38, %v556_v35 }
 0x100   : > { %v635_v42 = vpop.f32.mrf.mxu0 }
 0x101   : > { %v636_v43 = vadd.f32 %v635_v42, %v558_v39  ;;  %v708_v45 = vadd.f32 %v707_v41, %v634_v40 }
 0x103   : > { %v710_v46 = vadd.f32 %v709_v44, %v636_v43 }
 0x105   : > { %v714_v47 = vcombine.low %v708_v45, %v710_v46 }
 0x107   : > { %716 = vst [vmem:[%s232_s5] sm:$0x77] %v714_v47 }
 0x108 PF: > { %s16_s17 = sadd.s32 1, %s976_s17   ;;  %s1118_s12 = smov %s960_s13 }
 0x109   : > { %p13_p7 = scmp.ge.s32.totalorder %s16_s17, 4   ;;  %s1119_s13 = smov %s964_s14 }
 0x10a   : > { %s1120_s14 = smov %s1050_s24  ;;  %s1121_s15 = smov %s972_s16 }
 0x10b   : > { %s1122_s16 = smov %s1124_s19  ;;  %15 = sbr.rel (!%p13_p7) target bundleno = 4 (0x4), region = 75 }
 0x110   :  { %747 = vsyncpa [#allocation3], 1 }
 0x111   :  { %749 = vsyncpa [#allocation3 + $0x1], 1 }

</bundles_post_ra>
